<compile_context>
chip_gen: v5e
topology: v5e:2x2
jax: 0.10.0
libtpu: 0.0.40
codegen_flags: <defaults>
</compile_context>

<pallas_src>
import functools

import jax
import jax.numpy as jnp
from jax.experimental import pallas as pl
from jax.experimental.pallas import tpu as pltpu


def _round_up(x, m):
    return -(-x // m) * m


def _cosine_pairwise_kernel(row_ref, col_ref, xr_ref, xc_ref, lr_ref, lc_ref,
                            o_ref, e_row_c, *, c_pad, tm):
    """Processes one lower-triangle tile pair of the pairwise cosine-sim matrix.

    row_ref/col_ref : SMEM scalar-prefetch arrays with (row, col) tile indices
                      for every grid step (triangle-only 1-D grid, row-major).
    xr_ref/xc_ref   : (tm, D) bf16 pre-normalized feature tiles.
    lr_ref/lc_ref   : (1, tm) int32 labels (padding rows carry -1).
    o_ref           : (c_pad, tm) f32 resident accumulator (per-class partial
                      pair sums, lane-wide); lane-reduced in the wrapper.
    e_row_c         : (c_pad, tm) bf16 scratch caching the row one-hot.
    """
    t = pl.program_id(0)
    ri = row_ref[t]
    ci = col_ref[t]

    @pl.when(t == 0)
    def _init():
        o_ref[...] = jnp.zeros_like(o_ref)

    # Row one-hot depends only on the row tile; every row of tiles starts at
    # ci == 0, so rebuild only then (saves c_pad*tm VALU work on other steps).
    @pl.when(ci == 0)
    def _build_row_onehot():
        cls = jax.lax.broadcasted_iota(jnp.int32, (c_pad, tm), 0)
        e_row_c[...] = (cls == lr_ref[...]).astype(jnp.bfloat16)

    # Pairwise cosine similarity tile on the MXU (features pre-normalized).
    sim = jax.lax.dot_general(
        xr_ref[...], xc_ref[...], (((1,), (1,)), ((), ())),
        preferred_element_type=jnp.float32)                        # (tm, tm)

    cls = jax.lax.broadcasted_iota(jnp.int32, (c_pad, tm), 0)
    e_col = (cls == lc_ref[...]).astype(jnp.float32)               # (c_pad, tm)

    def _accumulate(masked_sim):
        # Per-class reduction as a second bf16-in / f32-acc MXU matmul.  The
        # one-hot is exact in bf16; sim accuracy is already bf16-bounded.
        tmat = jax.lax.dot_general(
            e_row_c[...], masked_sim.astype(jnp.bfloat16),
            (((1,), (0,)), ((), ())),
            preferred_element_type=jnp.float32)                    # (c_pad, tm)
        # Wide (lane-dense) accumulate; the lane reduction happens once, in
        # the wrapper, instead of a per-step cross-lane XLU reduce.
        o_ref[...] += tmat * e_col

    @pl.when(ri == ci)
    def _diagonal_tile():
        # Strict lower triangle via LOCAL iotas (square tile); only diagonal
        # tiles pay the iota + compare + select cost.
        r = jax.lax.broadcasted_iota(jnp.int32, (tm, tm), 0)
        c = jax.lax.broadcasted_iota(jnp.int32, (tm, tm), 1)
        _accumulate(jnp.where(r > c, sim, 0.0))

    @pl.when(ri != ci)
    def _off_diagonal_tile():
        # ri > ci: the whole tile is strictly below the diagonal -> no mask.
        _accumulate(sim)


def cosine_pairwise_loss(feature, pred, *, num_classes, tile=256):
    """feature: [N, D] float32, pred: [N] int labels in [0, num_classes)."""
    n, d = feature.shape

    # --- Normalize once in f32, then cast to bf16 for the kernel feeds. ----
    x = feature.astype(jnp.float32)
    # rsqrt(.+eps) differs from the reference's raw-norm division only for
    # exactly-zero rows (where the reference NaNs); benign.
    xn = x * jax.lax.rsqrt(jnp.sum(x * x, axis=-1, keepdims=True) + 1e-12)
    labels = pred.astype(jnp.int32)

    # --- Tile sizing.  Single tile for small N; otherwise tm must be a ------
    # multiple of 128 (lane width of the (1, tm) label blocks).
    if n <= tile:
        tm = max(8, _round_up(n, 8))
    else:
        assert tile % 128 == 0, "tile must be a multiple of 128 when N > tile"
        tm = tile
    n_pad = _round_up(n, tm)
    g = n_pad // tm

    if n_pad != n:
        xn = jnp.pad(xn, ((0, n_pad - n), (0, 0)))
        labels_k = jnp.pad(labels, (0, n_pad - n), constant_values=-1)
    else:
        labels_k = labels
    xn = xn.astype(jnp.bfloat16)
    labels2d = labels_k.reshape(1, n_pad)

    c_pad = max(8, _round_up(num_classes, 8))

    # --- Triangle-only grid (row-major so each row starts at col tile 0). ---
    pairs = [(i, j) for i in range(g) for j in range(i + 1)]
    row_idx = jnp.asarray([p[0] for p in pairs], dtype=jnp.int32)
    col_idx = jnp.asarray([p[1] for p in pairs], dtype=jnp.int32)

    kernel = functools.partial(_cosine_pairwise_kernel, c_pad=c_pad, tm=tm)

    # Explicit VMEM budget (matters on v7x's 64 MiB part / v5e's 16 MiB
    # default scoped limit): double-buffered bf16 feature/label tiles,
    # resident f32 accumulator, e_row cache, sim/one-hot intermediates.
    est = (2 * 2 * tm * d * 2          # xr, xc (bf16, double-buffered)
           + 2 * 2 * tm * 4            # label tiles (int32, double-buffered)
           + c_pad * tm * (4 + 2)      # output accumulator + e_row cache
           + 3 * tm * tm * 4           # sim / masked sim intermediates
           + 2 * c_pad * tm * 4)       # e_col / tmat intermediates
    vmem_limit = int(min(48 << 20, max(32 << 20, 2 * est)))

    s_wide = pl.pallas_call(
        kernel,
        out_shape=jax.ShapeDtypeStruct((c_pad, tm), jnp.float32),
        grid_spec=pltpu.PrefetchScalarGridSpec(
            num_scalar_prefetch=2,
            grid=(len(pairs),),
            in_specs=[
                pl.BlockSpec((tm, d), lambda t, ri, ci: (ri[t], 0)),   # rows
                pl.BlockSpec((tm, d), lambda t, ri, ci: (ci[t], 0)),   # cols
                pl.BlockSpec((1, tm), lambda t, ri, ci: (0, ri[t])),   # row lbl
                pl.BlockSpec((1, tm), lambda t, ri, ci: (0, ci[t])),   # col lbl
            ],
            out_specs=pl.BlockSpec((c_pad, tm), lambda t, ri, ci: (0, 0)),
            scratch_shapes=[pltpu.VMEM((c_pad, tm), jnp.bfloat16)],
        ),
        compiler_params=pltpu.CompilerParams(
            dimension_semantics=("arbitrary",),
            vmem_limit_bytes=vmem_limit),
    )(row_idx, col_idx, xn, xn, labels2d, labels2d)

    # --- Lane reduction + counts + final scalar loss in plain JAX. ---------
    s_c = jnp.sum(s_wide, axis=1)[:num_classes]                    # (C,)
    counts = jnp.sum(
        (labels[None, :] == jnp.arange(num_classes)[:, None]).astype(
            jnp.float32), axis=1)                                  # (C,)
    pair_cnt = counts * (counts - 1.0) * 0.5
    avg_c = s_c / jnp.maximum(pair_cnt, 1.0)
    cls_sum = jnp.sum(jnp.where(counts >= 2.0, avg_c, 0.0))
    n_unique = jnp.sum((counts >= 1.0).astype(jnp.float32))
    return 1.0 - cls_sum / jnp.maximum(n_unique, 1.0)


def _reference_loss(feature, pred, num_classes):
    """Plain-JAX f32 reference mirroring the PyTorch semantics."""
    xn = feature / jnp.linalg.norm(feature, axis=1, keepdims=True)
    sim = xn @ xn.T
    n = feature.shape[0]
    tri = jnp.arange(n)[:, None] > jnp.arange(n)[None, :]
    cls_sum = 0.0
    n_unique = 0.0
    for c in range(num_classes):
        m = pred == c
        n_c = jnp.sum(m.astype(jnp.float32))
        pair_mask = m[:, None] & m[None, :] & tri
        s_c = jnp.sum(jnp.where(pair_mask, sim, 0.0))
        pair_cnt = n_c * (n_c - 1.0) * 0.5
        avg_c = s_c / jnp.maximum(pair_cnt, 1.0)
        cls_sum = cls_sum + jnp.where(n_c >= 2.0, avg_c, 0.0)
        n_unique = n_unique + jnp.where(n_c >= 1.0, 1.0, 0.0)
    return 1.0 - cls_sum / jnp.maximum(n_unique, 1.0)


if __name__ == "__main__":
    NUM_CLASSES = 4
    key = jax.random.PRNGKey(0)

    # Case 1: single-tile path (small N).
    k1, k2, k3, k4 = jax.random.split(key, 4)
    feat_s = jax.random.normal(k1, (16, 32), dtype=jnp.float32)
    pred_s = jax.random.randint(k2, (16,), 0, NUM_CLASSES, dtype=jnp.int32)
    loss_s = jax.block_until_ready(
        cosine_pairwise_loss(feat_s, pred_s, num_classes=NUM_CLASSES))
    ref_s = _reference_loss(feat_s, pred_s, NUM_CLASSES)
    # bf16 MXU operands -> loosened tolerance vs the f32 reference.
    assert jnp.allclose(loss_s, ref_s, atol=1e-2), (loss_s, ref_s)

    # Case 2: multi-tile triangle grid (g = 2 -> 3 grid steps).
    feat_m = jax.random.normal(k3, (256, 32), dtype=jnp.float32)
    pred_m = jax.random.randint(k4, (256,), 0, NUM_CLASSES, dtype=jnp.int32)
    loss_m = jax.block_until_ready(
        cosine_pairwise_loss(feat_m, pred_m, num_classes=NUM_CLASSES,
                             tile=128))
    ref_m = _reference_loss(feat_m, pred_m, NUM_CLASSES)
    assert jnp.allclose(loss_m, ref_m, atol=1e-2), (loss_m, ref_m)

    print("KERNEL_OK")
</pallas_src>

<mosaic_0001>
module attributes {stable_mosaic.version = 11 : i64} {
  func.func @_cosine_pairwise_kernel(%arg0: i32, %arg1: memref<1xi32, #tpu.memory_space<smem>>, %arg2: memref<1xi32, #tpu.memory_space<smem>>, %arg3: memref<16x32xbf16, #tpu.memory_space<vmem>>, %arg4: memref<16x32xbf16, #tpu.memory_space<vmem>>, %arg5: memref<1x16xi32, #tpu.memory_space<vmem>>, %arg6: memref<1x16xi32, #tpu.memory_space<vmem>>, %arg7: memref<8x16xf32, #tpu.memory_space<vmem>>, %arg8: memref<8x16xbf16, #tpu.memory_space<vmem>>) attributes {dimension_semantics = [#tpu.dimension_semantics<arbitrary>], iteration_bounds = array<i64: 1>, scalar_prefetch = 2 : i64, scratch_operands = 1 : i64, tpu.core_type = #tpu.core_type<tc>, window_params = [{transform_indices = @transform_0, window_bounds = array<i64: 16, 32>}, {transform_indices = @transform_1, window_bounds = array<i64: 16, 32>}, {transform_indices = @transform_2, window_bounds = array<i64: 1, 16>}, {transform_indices = @transform_3, window_bounds = array<i64: 1, 16>}, {pipeline_mode = #tpu.pipeline_mode<synchronous>, transform_indices = @transform_4, window_bounds = array<i64: 8, 16>}]} {
    %0 = arith.index_cast %arg0 : i32 to index
    %1 = memref.load %arg1[%0] : memref<1xi32, #tpu.memory_space<smem>>
    %2 = arith.index_cast %arg0 : i32 to index
    %3 = memref.load %arg2[%2] : memref<1xi32, #tpu.memory_space<smem>>
    %c0_i32 = arith.constant 0 : i32
    %4 = arith.cmpi eq, %arg0, %c0_i32 : i32
    %5 = arith.extui %4 : i1 to i32
    %c0_i32_0 = arith.constant 0 : i32
    %6 = arith.cmpi ne, %5, %c0_i32_0 : i32
    scf.if %6 {
      %cst_10 = arith.constant 0.000000e+00 : f32
      %25 = vector.broadcast %cst_10 : f32 to vector<8x16xf32>
      %c0_11 = arith.constant 0 : index
      %c0_12 = arith.constant 0 : index
      %26 = vector.load %arg7[%c0_11, %c0_12] : memref<8x16xf32, #tpu.memory_space<vmem>>, vector<8x16xf32>
      tpu.vector_store %arg7[%c0_11, %c0_12], %25 {strides = array<i32>} : memref<8x16xf32, #tpu.memory_space<vmem>>, vector<8x16xf32>,
    } else {
    }
    %c0_i32_1 = arith.constant 0 : i32
    %7 = arith.cmpi eq, %3, %c0_i32_1 : i32
    %8 = arith.extui %7 : i1 to i32
    %c0_i32_2 = arith.constant 0 : i32
    %9 = arith.cmpi ne, %8, %c0_i32_2 : i32
    scf.if %9 {
      %25 = tpu.iota {dimensions = array<i32: 0>} : vector<8x16xi32>
      %c0_10 = arith.constant 0 : index
      %c0_11 = arith.constant 0 : index
      %26 = vector.load %arg5[%c0_10, %c0_11] : memref<1x16xi32, #tpu.memory_space<vmem>>, vector<1x16xi32>
      %27 = vector.broadcast %26 : vector<1x16xi32> to vector<8x16xi32>
      %28 = arith.cmpi eq, %25, %27 : vector<8x16xi32>
      %29 = arith.extui %28 : vector<8x16xi1> to vector<8x16xi32>
      %30 = arith.sitofp %29 : vector<8x16xi32> to vector<8x16xf32>
      %31 = arith.truncf %30 : vector<8x16xf32> to vector<8x16xbf16>
      %c0_12 = arith.constant 0 : index
      %c0_13 = arith.constant 0 : index
      %32 = vector.load %arg8[%c0_12, %c0_13] : memref<8x16xbf16, #tpu.memory_space<vmem>>, vector<8x16xbf16>
      tpu.vector_store %arg8[%c0_12, %c0_13], %31 {strides = array<i32>} : memref<8x16xbf16, #tpu.memory_space<vmem>>, vector<8x16xbf16>,
    } else {
    }
    %c0 = arith.constant 0 : index
    %c0_3 = arith.constant 0 : index
    %10 = vector.load %arg3[%c0, %c0_3] : memref<16x32xbf16, #tpu.memory_space<vmem>>, vector<16x32xbf16>
    %c0_4 = arith.constant 0 : index
    %c0_5 = arith.constant 0 : index
    %11 = vector.load %arg4[%c0_4, %c0_5] : memref<16x32xbf16, #tpu.memory_space<vmem>>, vector<16x32xbf16>
    %cst = arith.constant dense<0.000000e+00> : vector<16x16xf32>
    %12 = tpu.matmul %10, %11, %cst {dimension_numbers = #tpu.dot_dimension_numbers<[1], [1], [0], [0], [0, 0, 1, 0], [], []>} : vector<16x32xbf16>, vector<16x32xbf16>, vector<16x16xf32> -> vector<16x16xf32>
    %13 = tpu.iota {dimensions = array<i32: 0>} : vector<8x16xi32>
    %c0_6 = arith.constant 0 : index
    %c0_7 = arith.constant 0 : index
    %14 = vector.load %arg6[%c0_6, %c0_7] : memref<1x16xi32, #tpu.memory_space<vmem>>, vector<1x16xi32>
    %15 = vector.broadcast %14 : vector<1x16xi32> to vector<8x16xi32>
    %16 = arith.cmpi eq, %13, %15 : vector<8x16xi32>
    %17 = arith.extui %16 : vector<8x16xi1> to vector<8x16xi32>
    %18 = arith.sitofp %17 : vector<8x16xi32> to vector<8x16xf32>
    %19 = arith.cmpi eq, %1, %3 : i32
    %20 = arith.extui %19 : i1 to i32
    %c0_i32_8 = arith.constant 0 : i32
    %21 = arith.cmpi ne, %20, %c0_i32_8 : i32
    scf.if %21 {
      %25 = tpu.iota {dimensions = array<i32: 0>} : vector<16x16xi32>
      %26 = tpu.iota {dimensions = array<i32: 1>} : vector<16x16xi32>
      %27 = arith.cmpi sgt, %25, %26 : vector<16x16xi32>
      %cst_10 = arith.constant 0.000000e+00 : f32
      %28 = vector.broadcast %cst_10 : f32 to vector<16x16xf32>
      %29 = arith.select %27, %12, %28 : vector<16x16xi1>, vector<16x16xf32>
      %c0_11 = arith.constant 0 : index
      %c0_12 = arith.constant 0 : index
      %30 = vector.load %arg8[%c0_11, %c0_12] : memref<8x16xbf16, #tpu.memory_space<vmem>>, vector<8x16xbf16>
      %31 = arith.truncf %29 : vector<16x16xf32> to vector<16x16xbf16>
      %cst_13 = arith.constant dense<0.000000e+00> : vector<8x16xf32>
      %32 = tpu.matmul %30, %31, %cst_13 {dimension_numbers = #tpu.dot_dimension_numbers<[1], [0], [0], [1], [0, 0, 1, 1], [], []>} : vector<8x16xbf16>, vector<16x16xbf16>, vector<8x16xf32> -> vector<8x16xf32>
      %c0_14 = arith.constant 0 : index
      %c0_15 = arith.constant 0 : index
      %33 = vector.load %arg7[%c0_14, %c0_15] : memref<8x16xf32, #tpu.memory_space<vmem>>, vector<8x16xf32>
      %34 = arith.mulf %32, %18 : vector<8x16xf32>
      %35 = arith.addf %33, %34 : vector<8x16xf32>
      %c0_16 = arith.constant 0 : index
      %c0_17 = arith.constant 0 : index
      %36 = vector.load %arg7[%c0_16, %c0_17] : memref<8x16xf32, #tpu.memory_space<vmem>>, vector<8x16xf32>
      tpu.vector_store %arg7[%c0_16, %c0_17], %35 {strides = array<i32>} : memref<8x16xf32, #tpu.memory_space<vmem>>, vector<8x16xf32>,
    } else {
    }
    %22 = arith.cmpi ne, %1, %3 : i32
    %23 = arith.extui %22 : i1 to i32
    %c0_i32_9 = arith.constant 0 : i32
    %24 = arith.cmpi ne, %23, %c0_i32_9 : i32
    scf.if %24 {
      %c0_10 = arith.constant 0 : index
      %c0_11 = arith.constant 0 : index
      %25 = vector.load %arg8[%c0_10, %c0_11] : memref<8x16xbf16, #tpu.memory_space<vmem>>, vector<8x16xbf16>
      %26 = arith.truncf %12 : vector<16x16xf32> to vector<16x16xbf16>
      %cst_12 = arith.constant dense<0.000000e+00> : vector<8x16xf32>
      %27 = tpu.matmul %25, %26, %cst_12 {dimension_numbers = #tpu.dot_dimension_numbers<[1], [0], [0], [1], [0, 0, 1, 1], [], []>} : vector<8x16xbf16>, vector<16x16xbf16>, vector<8x16xf32> -> vector<8x16xf32>
      %c0_13 = arith.constant 0 : index
      %c0_14 = arith.constant 0 : index
      %28 = vector.load %arg7[%c0_13, %c0_14] : memref<8x16xf32, #tpu.memory_space<vmem>>, vector<8x16xf32>
      %29 = arith.mulf %27, %18 : vector<8x16xf32>
      %30 = arith.addf %28, %29 : vector<8x16xf32>
      %c0_15 = arith.constant 0 : index
      %c0_16 = arith.constant 0 : index
      %31 = vector.load %arg7[%c0_15, %c0_16] : memref<8x16xf32, #tpu.memory_space<vmem>>, vector<8x16xf32>
      tpu.vector_store %arg7[%c0_15, %c0_16], %30 {strides = array<i32>} : memref<8x16xf32, #tpu.memory_space<vmem>>, vector<8x16xf32>,
    } else {
    }
    return
  }
  func.func @transform_0(%arg0: i32, %arg1: memref<1xi32, #tpu.memory_space<smem>>, %arg2: memref<1xi32, #tpu.memory_space<smem>>) -> (i32, i32) {
    %0 = arith.index_cast %arg0 : i32 to index
    %1 = memref.load %arg1[%0] : memref<1xi32, #tpu.memory_space<smem>>
    %c0_i32 = arith.constant 0 : i32
    %c0_i32_0 = arith.constant 0 : i32
    return %1, %c0_i32 : i32, i32
  }
  func.func @transform_1(%arg0: i32, %arg1: memref<1xi32, #tpu.memory_space<smem>>, %arg2: memref<1xi32, #tpu.memory_space<smem>>) -> (i32, i32) {
    %0 = arith.index_cast %arg0 : i32 to index
    %1 = memref.load %arg2[%0] : memref<1xi32, #tpu.memory_space<smem>>
    %c0_i32 = arith.constant 0 : i32
    %c0_i32_0 = arith.constant 0 : i32
    return %1, %c0_i32 : i32, i32
  }
  func.func @transform_2(%arg0: i32, %arg1: memref<1xi32, #tpu.memory_space<smem>>, %arg2: memref<1xi32, #tpu.memory_space<smem>>) -> (i32, i32) {
    %0 = arith.index_cast %arg0 : i32 to index
    %1 = memref.load %arg1[%0] : memref<1xi32, #tpu.memory_space<smem>>
    %c0_i32 = arith.constant 0 : i32
    %c0_i32_0 = arith.constant 0 : i32
    return %c0_i32, %1 : i32, i32
  }
  func.func @transform_3(%arg0: i32, %arg1: memref<1xi32, #tpu.memory_space<smem>>, %arg2: memref<1xi32, #tpu.memory_space<smem>>) -> (i32, i32) {
    %0 = arith.index_cast %arg0 : i32 to index
    %1 = memref.load %arg2[%0] : memref<1xi32, #tpu.memory_space<smem>>
    %c0_i32 = arith.constant 0 : i32
    %c0_i32_0 = arith.constant 0 : i32
    return %c0_i32, %1 : i32, i32
  }
  func.func @transform_4(%arg0: i32, %arg1: memref<1xi32, #tpu.memory_space<smem>>, %arg2: memref<1xi32, #tpu.memory_space<smem>>) -> (i32, i32) {
    %c0_i32 = arith.constant 0 : i32
    %c0_i32_0 = arith.constant 0 : i32
    %c0_i32_1 = arith.constant 0 : i32
    return %c0_i32, %c0_i32_0 : i32, i32
  }
}

</mosaic_0001>

<bundles_post_ra>
// kernel: tpu_custom_call.1
= control target key start
LH: loop header
LB: loop body
LE: loop exit
PB: predicated region body
PF: predicated region fallthrough
CT: control target
= control target key end

     0   :  { %13 = vsyncpa [#allocation7], 0  ;;  %s469_s0 = inlined_call_operand.<no memory space> [shape: s32[1], index: 0, kind: input, shape index: {}]   ;;  %s470_s1 = inlined_call_operand.<no memory space> [shape: s32[1], index: 1, kind: input, shape index: {}]   ;;  %s471_s2 = inlined_call_operand.hbm [shape: bf16[16,32], index: 2, kind: input, shape index: {}]   ;;  %s472_s3 = inlined_call_operand.hbm [shape: bf16[16,32], index: 3, kind: input, shape index: {}]   ;;  %s473_s4 = inlined_call_operand.vmem [shape: s32[1,16], index: 4, kind: input, shape index: {}]   ;;  %s474_s5 = inlined_call_operand.vmem [shape: s32[1,16], index: 5, kind: input, shape index: {}]   ;;  %s475_s6 = inlined_call_operand.hbm [shape: f32[8,16], index: 6, kind: output, shape index: {}]  }
   0x1   :  { %14 = vsyncpa [#allocation10], 0 }
   0x2   :  { %15 = vsyncpa [#allocation8], 0  ;;  %s271_s23 = sshll.u32 %s469_s0, 3  ;;  %s362_s27 = smov [#allocation6]  }
   0x3   :  { %s23_s26 = scalar_lea.hbm %s471_s2, %s271_s23  ;;  %s26_s28 = sshll.u32 %s362_s27, 4  ;;  %s27_s28 = int_to_ptr.vmem [resolvable:$true] %s26_s28 }
   0x4   :  { %s24_s29 = sshll.u32 %s23_s26, 4  ;;  %s272_s8 = sshll.u32 %s470_s1, 3  ;;  %s25_s29 = int_to_ptr.hbm [resolvable:$true] %s24_s29 }
   0x5   :  { %s284_s9 = sshra.s32 %s25_s29, 4  ;;  %s288_s13 = scalar_lea.hbm %s471_s2, 8  ;;  %s285_s9 = int_to_ptr.hbm [resolvable:$true] %s284_s9 }
   0x6   :  { %s286_s10 = scalar_lea.hbm %s285_s9, 8  ;;  %p289_p1 = scmp.lt.s32.totalorder %s285_s9, %s471_s2 }
   0x7   :  { %p287_p0 = scmp.ne.s32.totalorder %s285_s9, %s286_s10  ;;  %p290_p2 = scmp.lt.s32.totalorder %s288_s13, %s286_s10 }
   0x9   :  { %p291_p3 = por %p290_p2, %p289_p1 }
   0xb   :  { %p292_p4 = pnand %p291_p3, %p287_p0 }
   0xd   :  { %295 = shalt.err (!%p292_p4)
}
   0xe   :  { %s363_s16 = smov 64   ;;  %s364_s17 = smov 4  }
   0xf   :  { %32 = dma.hbm_to_vmem [thread:$0]  %s25_s29, 128, %s27_s28, [#allocation7], %s363_s16, %s363_s16, %s364_s17  }
  0x10   :  { %s40_s20 = scalar_lea.hbm %s472_s3, %s272_s8  ;;  %s365_s22 = smov [#allocation9]  }
  0x11   :  { %s41_s21 = sshll.u32 %s40_s20, 4  ;;  %s43_s23 = sshll.u32 %s365_s22, 4  ;;  %s42_s21 = int_to_ptr.hbm [resolvable:$true] %s41_s21  ;;  %s44_s23 = int_to_ptr.vmem [resolvable:$true] %s43_s23 }
  0x12   :  { %s308_s24 = sshra.s32 %s42_s21, 4  ;;  %s312_s27 = scalar_lea.hbm %s472_s3, 8  ;;  %s309_s24 = int_to_ptr.hbm [resolvable:$true] %s308_s24 }
  0x13   :  { %s310_s25 = scalar_lea.hbm %s309_s24, 8  ;;  %p313_p6 = scmp.lt.s32.totalorder %s309_s24, %s472_s3 }
  0x14   :  { %p311_p5 = scmp.ne.s32.totalorder %s309_s24, %s310_s25  ;;  %p314_p7 = scmp.lt.s32.totalorder %s312_s27, %s310_s25 }
  0x16   :  { %p315_p8 = por %p314_p7, %p313_p6 }
  0x18   :  { %p316_p9 = pnand %p315_p8, %p311_p5 }
  0x1a   :  { %319 = shalt.err (!%p316_p9)
}
  0x1b   :  { %49 = dma.hbm_to_vmem [thread:$0]  %s42_s21, 128, %s44_s23, [#allocation10], %s363_s16, %s363_s16, %s364_s17  }
  0x1c   :  { %356 = dma.done.wait [#allocation7], 128  }
  0x1d   :  { %357 = vsyncadd [#allocation7], 4294967168 }
  0x1e   :  { %358 = dma.done.wait [#allocation10], 128  }
  0x1f   :  { %359 = vsyncadd [#allocation10], 4294967168  ;;  %p85_p10 = scmp.lt.s32.totalorder %s469_s0, 0  ;;  %p90_p11 = scmp.lt.s32.totalorder %s470_s1, 0  ;;  %vm101_vm0 = vcmask 130048   ;;  %v366_v0 = vmov 0.0  }
  0x20   :  { %102 = vst.msk [vmem:[#allocation11] sm:$0xff] %vm101_vm0, %v366_v0  ;;  %p252_p12 = scmp.ne.s32.totalorder %s470_s1, 0 }
  0x21   :  { %s86_s11 = scalar_select %p85_p10, %s469_s0, 0 }
  0x22   :  { %s91_s14 = scalar_select %p90_p11, %s470_s1, 0 }
  0x23   :  { %s87_s17 = scalar_lea.vmem %s473_s4, %s86_s11  ;;  %106 = sbr.rel (%p252_p12) target bundleno = 49 (0x31), region = 33 }
  0x24   :  { %s92_s20 = scalar_lea.vmem %s474_s5, %s91_s14 }
  0x28   :  { %v107_v1 = vlaneseq  ;;  %v282_v2 = vld [vmem:[%s87_s17] ss:$0 sm:$0xff]  ;;  %v367_v4 = vmov 0.0   ;;  %vm115_vm2 = vcmask 125952  }
  0x2a   :  { %v108_v3 = vshrl.u32 %v107_v1, 7 }
  0x2c   :  { %vm111_vm1 = vcmp.eq.s32.totalorder %v108_v3, %v282_v2 }
  0x2d   :  { %v253_v5 = vsel %vm111_vm1, 1.0, %v367_v4 }
  0x2e   :  { %v114_v6 = vpack.c.bf16 %v253_v5, %v253_v5 }
  0x30   :  { %116 = vst.msk [vmem:[#allocation2] sm:$0xf] %vm115_vm2, %v114_v6 }
  0x31 PF:  { %v274_v7 = vld [vmem:[#allocation9] sm:$0xff]  ;;  %vm131_vm3 = vcmask 261120   ;;  %v273_v9 = vld [vmem:[#allocation6] sm:$0xff]  ;;  %v152_v10 = vlaneseq  ;;  %v283_v12 = vld [vmem:[%s92_s20] ss:$0 sm:$0xff]  ;;  %p264_p13 = scmp.ne.s32.totalorder %s469_s0, %s470_s1 }
  0x32   :  { %v136_v8 = vsel %vm131_vm3, %v274_v7, 0 }
  0x33   :  { %145 = vmatpush.bf16.xpose.msra.mxu0 %v136_v8  ;;  %v153_v11 = vshrl.u32 %v152_v10, 7 }
  0x35   :  { %vm156_vm4 = vcmp.eq.s32.totalorder %v153_v11, %v283_v12 }
  0x36   :  { %v263_v13 = vsel %vm156_vm4, 1.0, %v366_v0 }
  0x3a   :  { %262 = vmatmul.msk.bf16.vlgmr.msra.gmra.mxu0 %vm131_vm3, %v273_v9 }
  0xb7   :  { %v147_v14 = vpop.f32.mrf.mxu0 }
  0xbb   :  { %162 = sbr.rel (%p264_p13) target bundleno = 333 (0x14d), region = 37 }
  0xbf   :  { %v149_v15 = vpop.f32.mrf.mxu0 }
  0xc0   :  { %v163_v16 = vadd.s32 8, %v153_v11  ;;  %v165_v17 = vand.u32 127, %v152_v10  ;;  %v266_v18 = vpack.c.bf16 %v149_v15, %v147_v14  ;;  %v170_v19 = vld [vmem:[#allocation2] sm:$0xf]  ;;  %v189_v21 = vld [vmem:[#allocation11] sm:$0xff] }
  0xc2   :  { %vm166_vm5 = vcmp.gt.s32.totalorder %v153_v11, %v165_v17  ;;  %vm167_vm6 = vcmp.gt.s32.totalorder %v163_v16, %v165_v17 }
  0xc3   :  { %vm265_vm7 = vmpackc.low %vm167_vm6, %vm166_vm5 }
  0xc4   :  { %267 = vmatpush.bf16.msk.msra.mxu0 %vm265_vm7, %v266_v18 }
  0xc7   :  { %268 = vmatmul.msk.bf16.vlgmr.msra.gmra.mxu0 %vm101_vm0, %v170_v19 }
 0x144   :  { %v185_v20 = vpop.f32.mrf.mxu0 }
 0x145   :  { %v190_v22 = vmul.f32 %v263_v13, %v185_v20 }
 0x147   :  { %v191_v23 = vadd.f32 %v190_v22, %v189_v21 }
 0x149   :  { %192 = vst.msk [vmem:[#allocation11] sm:$0xff] %vm101_vm0, %v191_v23 }
 0x14c   :  { %v187_v24 = vpop.f32.mrf.mxu0 }
 0x14d PF:  { %p269_p0 = scmp.eq.s32.totalorder %s469_s0, %s470_s1 }
 0x14f   :  { %196 = sbr.rel (%p269_p0) target bundleno = 479 (0x1df), region = 41 }
 0x154   :  { %v198_v25 = vpack.c.bf16 %v149_v15, %v147_v14  ;;  %v197_v26 = vld [vmem:[#allocation2] sm:$0xf]  ;;  %v216_v28 = vld [vmem:[#allocation11] sm:$0xff] }
 0x156   :  { %210 = vmatpush.bf16.msra.mxu0 %v198_v25 }
 0x159   :  { %270 = vmatmul.msk.bf16.vlgmr.msra.gmra.mxu0 %vm101_vm0, %v197_v26 }
 0x1d6   :  { %v212_v27 = vpop.f32.mrf.mxu0 }
 0x1d7   :  { %v217_v29 = vmul.f32 %v263_v13, %v212_v27 }
 0x1d9   :  { %v218_v30 = vadd.f32 %v217_v29, %v216_v28 }
 0x1db   :  { %219 = vst.msk [vmem:[#allocation11] sm:$0xff] %vm101_vm0, %v218_v30 }
 0x1de   :  { %v214_v31 = vpop.f32.mrf.mxu0 }
 0x1df PF:  { %s227_s28 = sshll.u32 %s475_s6, 4  ;;  %s368_s29 = smov [#allocation11]   ;;  %s228_s28 = int_to_ptr.hbm [resolvable:$true] %s227_s28 }
 0x1e0   :  { %s225_s0 = sshll.u32 %s368_s29, 4  ;;  %s226_s0 = int_to_ptr.vmem [resolvable:$true] %s225_s0 }
 0x1e1   :  { %230 = dma.vmem_to_hbm [thread:$0]  %s226_s0, 128, %s228_s28, [#allocation8]  }
 0x1e2   :  { %360 = dma.done.wait [#allocation8], 128  }
 0x1e3   :  { %361 = vsyncadd [#allocation8], 4294967168 }
 0x1e4   :  { %235 = vsyncpa [#allocation7], 1 }
 0x1e5   :  { %236 = vsyncpa [#allocation10], 1 }
 0x1e6   :  { %237 = vsyncpa [#allocation8], 1 }

</bundles_post_ra>
